<compile_context>
chip_gen: v6e
topology: v6e:2x2x1
jax: 0.10.0
libtpu: 0.0.40
codegen_flags: <defaults>
</compile_context>

<pallas_src>
import jax
import jax.numpy as jnp
from jax.experimental import pallas as pl
from jax.experimental.pallas import tpu as pltpu


# ---------------------------------------------------------------------------
# Sorter kernel: 1x1 Conv1d (channel-mixing matmul) + argmax over channels.
# ---------------------------------------------------------------------------
def sorter_kernel(x_ref, w_ref, b_ref, val_ref, id_ref):
    """x_ref: (C_in, T), w_ref: (C_out, C_in), b_ref: (C_out, 1)
       val_ref: (C_out, T), id_ref: (1, T) int32"""
    x = x_ref[...]
    w = w_ref[...]
    b = b_ref[...]

    # 1x1 Conv1d == channel-mixing matmul (MXU) + bias broadcast (VPU).
    val = jnp.dot(w, x, preferred_element_type=jnp.float32) + b
    val_ref[...] = val.astype(val_ref.dtype)

    # argmax over the channel (sublane) axis, first index on ties. Columns with
    # NaN resolve to the first NaN position instead of an out-of-range index.
    c_out = val.shape[0]
    row_ids = jax.lax.broadcasted_iota(jnp.int32, val.shape, 0)
    max_val = jnp.max(val, axis=0, keepdims=True)
    hit = (val == max_val) | jnp.isnan(val)
    first_idx = jnp.min(jnp.where(hit, row_ids, jnp.int32(c_out)),
                        axis=0, keepdims=True)
    id_ref[...] = first_idx.astype(jnp.int32)


def _pick_tile_n(n, max_tile=2048):
    """Lane tile: a multiple of 128 (up to max_tile); tiny N falls back to N."""
    if n <= 128:
        return n
    return (min(max_tile, n) // 128) * 128


def sorter_forward(x, w, b, *, tile_n=None):
    """x: (B, C_in, N) f32, w: (C_out, C_in), b: (C_out,)
       returns (val_activa: (B, C_out, N) f32, id_activa: (B, N) int32)"""
    B, C_in, N = x.shape
    C_out = w.shape[0]
    if tile_n is None:
        tile_n = _pick_tile_n(N)
    grid = (B, pl.cdiv(N, tile_n))

    b2 = b.reshape(C_out, 1)

    val, ids = pl.pallas_call(
        sorter_kernel,
        out_shape=(
            jax.ShapeDtypeStruct((B, C_out, N), x.dtype),
            jax.ShapeDtypeStruct((B, 1, N), jnp.int32),
        ),
        grid=grid,
        in_specs=[
            # Streaming input: one (C_in, tile_n) slab per grid step.
            pl.BlockSpec((pl.Squeezed(), C_in, tile_n),
                         lambda bi, ni: (bi, 0, ni)),
            # Weights / bias: constant block index -> resident across the grid.
            pl.BlockSpec((C_out, C_in), lambda bi, ni: (0, 0)),
            pl.BlockSpec((C_out, 1), lambda bi, ni: (0, 0)),
        ],
        out_specs=(
            pl.BlockSpec((pl.Squeezed(), C_out, tile_n),
                         lambda bi, ni: (bi, 0, ni)),
            pl.BlockSpec((pl.Squeezed(), 1, tile_n),
                         lambda bi, ni: (bi, 0, ni)),
        ),
        compiler_params=pltpu.CompilerParams(
            dimension_semantics=("parallel", "parallel")),
        cost_estimate=pl.CostEstimate(
            flops=2 * B * N * C_out * C_in,
            bytes_accessed=4 * (B * N * (C_in + C_out + 1)
                                + C_out * C_in + C_out),
            transcendentals=0),
    )(x, w, b2)

    # TODO(synk): PyTorch argmax returns int64; int32 used here (TPU-native).
    return val, ids[:, 0, :]


# ---------------------------------------------------------------------------
# SoftPool forward (scope='local') around the Pallas Sorter kernel.
# ---------------------------------------------------------------------------
def train2cabins(windows, num_cabin):
    """windows: (B, F, R, P) -> (B, F, R, num_cabin), max over each cabin."""
    B, F, R, P = windows.shape
    points_cabin = P // num_cabin
    return jnp.max(windows.reshape(B, F, R, num_cabin, points_cabin), axis=4)


def softpool_forward(x, w_sorter, b_sorter, *, num_cabin=8, sp_ratio=4):
    """JAX/Pallas port of SoftPool.forward (scope='local').
       x: (B, size_feat, N) -> (sp_cube, sp_idx, cabins, id_activa)."""
    B, size_feat, N = x.shape
    regions = w_sorter.shape[0]
    pnt_per_sort = N // sp_ratio

    # Sorter: Pallas kernel (1x1 conv + channel argmax).
    val_activa, id_activa = sorter_forward(x, w_sorter, b_sorter)

    # Per-region descending sort + keep top pnt_per_sort point indices
    # (== torch.sort(descending=True)[1][:, :k]).
    _, top_idx = jax.lax.top_k(val_activa, pnt_per_sort)          # (B, R, P)

    # Gather the selected points' features for every region (torch.gather).
    x_b = jnp.broadcast_to(x[:, :, None, :], (B, size_feat, regions, N))
    idx_b = jnp.broadcast_to(top_idx[:, None, :, :],
                             (B, size_feat, regions, pnt_per_sort))
    sp_cube = jnp.take_along_axis(x_b, idx_b, axis=3)             # (B, F, R, P)

    sp_idx = jnp.broadcast_to(top_idx[:, None, :, :].astype(x.dtype),
                              (B, regions + 3, regions, pnt_per_sort))

    cabins = train2cabins(sp_cube, num_cabin)                     # (B, F, R, cabins)

    # TODO(synk): conv2d_1/2/3/5 (trains / station / sp_windows) in the PyTorch
    # forward only feed the dead scope=='global' branch; they do not affect the
    # returned (sp_cube, sp_idx, cabins, id_activa), so they are omitted here.
    return sp_cube, sp_idx, cabins, id_activa


if __name__ == "__main__":
    # Small shapes consistent with SoftPool: x is (B, size_feat, N), the sorter
    # is Conv1d(size_feat, regions, 1); N divisible by sp_ratio * num_cabin.
    B, size_feat, regions = 2, 32, 8
    num_cabin, sp_ratio = 4, 4
    N = 256
    pnt_per_sort = N // sp_ratio

    key = jax.random.PRNGKey(0)
    kx, kw, kb = jax.random.split(key, 3)
    x = jax.random.normal(kx, (B, size_feat, N), dtype=jnp.float32)
    bound = 1.0 / (size_feat ** 0.5)   # torch Conv1d default init bound
    w = jax.random.uniform(kw, (regions, size_feat), minval=-bound,
                           maxval=bound, dtype=jnp.float32)
    b = jax.random.uniform(kb, (regions,), minval=-bound, maxval=bound,
                           dtype=jnp.float32)

    fwd = jax.jit(softpool_forward, static_argnames=("num_cabin", "sp_ratio"))
    sp_cube, sp_idx, cabins, id_activa = fwd(
        x, w, b, num_cabin=num_cabin, sp_ratio=sp_ratio)
    jax.block_until_ready((sp_cube, sp_idx, cabins, id_activa))

    # --- sanity checks against a pure-JAX reference of the same math ---
    val_k, id_k = jax.jit(sorter_forward)(x, w, b)
    val_ref = jnp.einsum("oc,bcn->bon", w, x) + b[None, :, None]
    id_ref = jnp.argmax(val_ref, axis=1).astype(jnp.int32)

    _, top_ref = jax.lax.top_k(val_ref, pnt_per_sort)
    sp_cube_ref = jnp.take_along_axis(
        jnp.broadcast_to(x[:, :, None, :], (B, size_feat, regions, N)),
        jnp.broadcast_to(top_ref[:, None, :, :],
                         (B, size_feat, regions, pnt_per_sort)),
        axis=3)
    cabins_ref = train2cabins(sp_cube_ref, num_cabin)

    assert val_k.shape == (B, regions, N)
    assert id_activa.shape == (B, N)
    assert sp_cube.shape == (B, size_feat, regions, pnt_per_sort)
    assert sp_idx.shape == (B, regions + 3, regions, pnt_per_sort)
    assert cabins.shape == (B, size_feat, regions, num_cabin)
    assert jnp.allclose(val_k, val_ref, atol=1e-4, rtol=1e-4)
    assert jnp.array_equal(id_k, id_ref)
    assert jnp.array_equal(id_activa, id_ref)
    assert jnp.allclose(sp_cube, sp_cube_ref, atol=1e-5, rtol=1e-5)
    assert jnp.allclose(cabins, cabins_ref, atol=1e-5, rtol=1e-5)

    print("KERNEL_OK")
</pallas_src>

<mosaic_0001>
module attributes {stable_mosaic.version = 11 : i64} {
  func.func @sorter_kernel(%arg0: i32, %arg1: i32, %arg2: memref<1x32x256xf32, #tpu.memory_space<vmem>>, %arg3: memref<8x32xf32, #tpu.memory_space<vmem>>, %arg4: memref<8x1xf32, #tpu.memory_space<vmem>>, %arg5: memref<1x8x256xf32, #tpu.memory_space<vmem>>, %arg6: memref<1x1x256xi32, #tpu.memory_space<vmem>>) attributes {dimension_semantics = [#tpu.dimension_semantics<parallel>, #tpu.dimension_semantics<parallel>], iteration_bounds = array<i64: 2, 1>, scalar_prefetch = 0 : i64, scratch_operands = 0 : i64, tpu.core_type = #tpu.core_type<tc>, window_params = [{transform_indices = @transform_0, window_bounds = array<i64: 1, 32, 256>}, {pipeline_mode = #tpu.pipeline_mode<synchronous>, transform_indices = @transform_1, window_bounds = array<i64: 8, 32>}, {pipeline_mode = #tpu.pipeline_mode<synchronous>, transform_indices = @transform_2, window_bounds = array<i64: 8, 1>}, {transform_indices = @transform_3, window_bounds = array<i64: 1, 8, 256>}, {transform_indices = @transform_4, window_bounds = array<i64: 1, 1, 256>}]} {
    %c0 = arith.constant 0 : index
    %c0_0 = arith.constant 0 : index
    %c0_1 = arith.constant 0 : index
    %0 = vector.load %arg2[%c0, %c0_0, %c0_1] : memref<1x32x256xf32, #tpu.memory_space<vmem>>, vector<1x32x256xf32>
    %1 = vector.shape_cast %0 : vector<1x32x256xf32> to vector<32x256xf32>
    %c0_2 = arith.constant 0 : index
    %c0_3 = arith.constant 0 : index
    %2 = vector.load %arg3[%c0_2, %c0_3] : memref<8x32xf32, #tpu.memory_space<vmem>>, vector<8x32xf32>
    %c0_4 = arith.constant 0 : index
    %c0_5 = arith.constant 0 : index
    %3 = vector.load %arg4[%c0_4, %c0_5] : memref<8x1xf32, #tpu.memory_space<vmem>>, vector<8x1xf32>
    %cst = arith.constant dense<0.000000e+00> : vector<8x256xf32>
    %4 = tpu.matmul %2, %1, %cst {dimension_numbers = #tpu.dot_dimension_numbers<[1], [0], [0], [1], [0, 0, 1, 1], [], []>} : vector<8x32xf32>, vector<32x256xf32>, vector<8x256xf32> -> vector<8x256xf32>
    %5 = vector.broadcast %3 : vector<8x1xf32> to vector<8x256xf32>
    %6 = arith.addf %4, %5 : vector<8x256xf32>
    %c0_6 = arith.constant 0 : index
    %c0_7 = arith.constant 0 : index
    %c0_8 = arith.constant 0 : index
    %7 = vector.load %arg5[%c0_6, %c0_7, %c0_8] : memref<1x8x256xf32, #tpu.memory_space<vmem>>, vector<1x8x256xf32>
    %8 = vector.shape_cast %7 : vector<1x8x256xf32> to vector<8x256xf32>
    %9 = vector.shape_cast %6 : vector<8x256xf32> to vector<1x8x256xf32>
    tpu.vector_store %arg5[%c0_6, %c0_7, %c0_8], %9 {strides = array<i32>} : memref<1x8x256xf32, #tpu.memory_space<vmem>>, vector<1x8x256xf32>,
    %10 = tpu.iota {dimensions = array<i32: 0>} : vector<8x256xi32>
    %cst_9 = arith.constant dense<0xFF800000> : vector<256xf32>
    %11 = vector.multi_reduction <maximumf>, %6, %cst_9 [0] : vector<8x256xf32> to vector<256xf32>
    %12 = vector.shape_cast %11 : vector<256xf32> to vector<1x256xf32>
    %13 = vector.broadcast %12 : vector<1x256xf32> to vector<8x256xf32>
    %14 = arith.cmpf oeq, %6, %13 : vector<8x256xf32>
    %15 = arith.cmpf one, %6, %6 : vector<8x256xf32>
    %16 = arith.ori %14, %15 : vector<8x256xi1>
    %c8_i32 = arith.constant 8 : i32
    %17 = vector.broadcast %c8_i32 : i32 to vector<8x256xi32>
    %18 = arith.select %16, %10, %17 : vector<8x256xi1>, vector<8x256xi32>
    %cst_10 = arith.constant dense<2147483647> : vector<256xi32>
    %19 = vector.multi_reduction <minsi>, %18, %cst_10 [0] : vector<8x256xi32> to vector<256xi32>
    %20 = vector.shape_cast %19 : vector<256xi32> to vector<1x256xi32>
    %c0_11 = arith.constant 0 : index
    %c0_12 = arith.constant 0 : index
    %c0_13 = arith.constant 0 : index
    %21 = vector.load %arg6[%c0_11, %c0_12, %c0_13] : memref<1x1x256xi32, #tpu.memory_space<vmem>>, vector<1x1x256xi32>
    %22 = vector.shape_cast %21 : vector<1x1x256xi32> to vector<1x256xi32>
    %23 = vector.shape_cast %20 : vector<1x256xi32> to vector<1x1x256xi32>
    tpu.vector_store %arg6[%c0_11, %c0_12, %c0_13], %23 {strides = array<i32>} : memref<1x1x256xi32, #tpu.memory_space<vmem>>, vector<1x1x256xi32>,
    return
  }
  func.func @transform_0(%arg0: i32, %arg1: i32) -> (i32, i32, i32) {
    %c0_i32 = arith.constant 0 : i32
    %c0_i32_0 = arith.constant 0 : i32
    return %arg0, %c0_i32, %arg1 : i32, i32, i32
  }
  func.func @transform_1(%arg0: i32, %arg1: i32) -> (i32, i32) {
    %c0_i32 = arith.constant 0 : i32
    %c0_i32_0 = arith.constant 0 : i32
    %c0_i32_1 = arith.constant 0 : i32
    return %c0_i32, %c0_i32_0 : i32, i32
  }
  func.func @transform_2(%arg0: i32, %arg1: i32) -> (i32, i32) {
    %c0_i32 = arith.constant 0 : i32
    %c0_i32_0 = arith.constant 0 : i32
    %c0_i32_1 = arith.constant 0 : i32
    return %c0_i32, %c0_i32_0 : i32, i32
  }
  func.func @transform_3(%arg0: i32, %arg1: i32) -> (i32, i32, i32) {
    %c0_i32 = arith.constant 0 : i32
    %c0_i32_0 = arith.constant 0 : i32
    return %arg0, %c0_i32, %arg1 : i32, i32, i32
  }
  func.func @transform_4(%arg0: i32, %arg1: i32) -> (i32, i32, i32) {
    %c0_i32 = arith.constant 0 : i32
    %c0_i32_0 = arith.constant 0 : i32
    return %arg0, %c0_i32, %arg1 : i32, i32, i32
  }
}

</mosaic_0001>

<bundles_post_ra>
// kernel: softpool_forward.1
= control target key start
LH: loop header
LB: loop body
LE: loop exit
PB: predicated region body
PF: predicated region fallthrough
CT: control target
= control target key end

     0   :  { %10 = vsyncpa [#allocation3], 0  ;;  %s946_s0 = inlined_call_operand.hbm [shape: f32[2,32,256], index: 0, kind: input, shape index: {}]   ;;  %s947_s1 = inlined_call_operand.hbm [shape: f32[8,32], index: 1, kind: input, shape index: {}]   ;;  %s948_s2 = inlined_call_operand.vmem [shape: f32[8,1], index: 2, kind: input, shape index: {}]   ;;  %s949_s3 = inlined_call_operand.vmem [shape: f32[2,8,256], index: 3, kind: output, shape index: {0}]   ;;  %s950_s4 = inlined_call_operand.vmem [shape: s32[2,1,256], index: 4, kind: output, shape index: {1}]  }
   0x1   :  { %12 = vsyncpa [#allocation3 + $0x1], 0 }
   0x2   :  { %13 = vsyncpa [#allocation5], 0  ;;  %s815_s15 = smov 0   ;;  %s817_s16 = smov 0  }
   0x3   :  { %s819_s17 = smov 0   ;;  %s821_s18 = smov 0  }
   0x4   :  { %s823_s19 = smov 0   ;;  %s825_s20 = smov 0  }
   0x5 LB: > { %s582_s21 = sadd.s32 4294967295, %s781_s20   ;;  %s40_s22 = sadd.s32 1, %s769_s17  ;;  %s781_s20 = sphi %s825_s20, %s19_s20   ;;  %s777_s19 = sphi %s823_s19, %s964_s19   ;;  %s773_s18 = sphi %s821_s18, %s963_s18   ;;  %s769_s17 = sphi %s819_s17, %s962_s17   ;;  %s765_s16 = sphi %s817_s16, %s961_s16   ;;  %s761_s15 = sphi %s815_s15, %s960_s15  }
   0x6   : > { %p47_p0 = scmp.ne.s32.totalorder %s769_s17, %s765_s16  ;;  %p48_p1 = scmp.eq.s32.totalorder %s781_s20, 0 }
   0x7   : > { %p53_p2 = scmp.ne.s32.totalorder %s765_s16, %s761_s15  ;;  %p849_p3 = scmp.eq.s32.totalorder %s582_s21, 0 }
   0x8   : > { %p49_p4 = por %p48_p1, %p47_p0  ;;  %p584_p5 = scmp.ge.s32.totalorder %s781_s20, 1 }
   0x9   : > { %p856_p6 = por %p849_p3, %p53_p2  ;;  %p162_p7 = scmp.lt.s32.totalorder %s781_s20, 3 }
   0xa   : > { %s783_s26 = smov [#allocation4]   ;;  %p616_p10 = scmp.lt.s32.totalorder %s781_s20, 2 }
   0xb   : > { %s954_s24 = scalar_select %p856_p6, 1, 0 }
   0xc   : > { %p861_p8 = pnand %p584_p5, %p162_p7  ;;  %s175_s27 = sshll.u32 %s783_s26, 4  ;;  %s176_s27 = int_to_ptr.vmem [resolvable:$true] %s175_s27 }
   0xd   : > { %s189_s28 = sand.u32 1, %s769_s17   ;;  %p871_p12 = pnand %p616_p10, %p49_p4 }
   0xe   : > { %s955_s25 = scalar_select %p861_p8, 1, 0 }
   0xf   : > { %p607_p9 = pneg %p861_p8  ;;  %s684_s30 = scalar_lea.vmem %s176_s27, 128 }
  0x10   : > { %p685_p0 = scmp.ne.s32.totalorder %s176_s27, %s684_s30  ;;  %p692_p5 = scmp.lt.s32.totalorder %s176_s27, %s176_s27 }
  0x11   : > { %p608_p11 = pnand %p607_p9, %p849_p3  ;;  %p693_p7 = scmp.lt.s32.totalorder %s684_s30, %s684_s30 }
  0x13   : > { %p675_p13 = pneg %p608_p11  ;;  %p694_p6 = por %p693_p7, %p692_p5 }
  0x15   : > { %p687_p1 = pnand %p685_p0, %p675_p13 }
  0x17   : > { %p688_p2 = pneg %p687_p1 }
  0x19   : > { %p695_p8 = pnand %p694_p6, %p688_p2 }
  0x1b   : > { %698 = shalt.err (!%p695_p8)
}
  0x1c   : > { %610 = dma.hbm_to_vmem [thread:$0]  (!%p608_p11), %s947_s1, 128, %s176_s27, [#allocation5]  }
  0x1d   : > { %s31_s7 = sadd.s32 1, %s777_s19  ;;  %s587_s8 = sshll.u32 %s189_s28, 6 }
  0x1e   : > { %p33_p4 = scmp.ge.s32.totalorder %s31_s7, 2  ;;  %s599_s9 = sshll.u32 %s777_s19, 10 }
  0x1f   : > { %s193_s10 = scalar_lea.vmem [#allocation2], %s587_s8  ;;  %s201_s14 = scalar_lea.hbm %s946_s0, %s599_s9 }
  0x20   : > { %s202_s11 = sshll.u32 %s193_s10, 4  ;;  %s966_s7 = smov (%p33_p4, %s31_s7), 0  ;;  %s203_s11 = int_to_ptr.vmem [resolvable:$true] %s202_s11 }
  0x21   : > { %s35_s15 = ssub.s32 %s777_s19, %s966_s7  ;;  %s190_s26 = scalar_lea.sflag [#allocation3], %s189_s28 }
  0x22   : > { %p887_p6 = scmp.eq.s32.totalorder %s35_s15, 0  ;;  %p701_p8 = pneg %p871_p12 }
  0x23   : > { %s712_s27 = scalar_lea.vmem %s203_s11, 1024  ;;  %s784_s30 = smov [#allocation2]  }
  0x24   : > { %p713_p9 = scmp.ne.s32.totalorder %s203_s11, %s712_s27  ;;  %s717_s5 = sshll.u32 %s784_s30, 4  ;;  %s718_s5 = int_to_ptr.vmem [resolvable:$false] %s717_s5 }
  0x25   : > { %s719_s6 = scalar_lea.vmem %s718_s5, 2048  ;;  %p720_p13 = scmp.lt.s32.totalorder %s203_s11, %s718_s5 }
  0x26   : > { %p715_p10 = pnand %p713_p9, %p701_p8  ;;  %p721_p0 = scmp.lt.s32.totalorder %s719_s6, %s712_s27 }
  0x28   : > { %p716_p11 = pneg %p715_p10  ;;  %p722_p1 = por %p721_p0, %p720_p13 }
  0x2a   : > { %p723_p2 = pnand %p722_p1, %p716_p11 }
  0x2c   : > { %726 = shalt.err (!%p723_p2)
}
  0x2d   : > { %s785_s8 = smov 256   ;;  %s786_s28 = smov 16  }
  0x2e   : > { %614 = dma.hbm_to_vmem [thread:$0]  (!%p871_p12), %s201_s14, 1024, %s203_s11, %s190_s26, %s785_s8, %s785_s8, %s786_s28  }
  0x2f   : > { %s900_s9 = scalar_select %p887_p6, %s769_s17, %s40_s22  }
  0x30   : > { %p958_p5 = scmp.ne.s32.totalorder %s955_s25, 0 }
  0x31   : > { %s216_s10 = sand.u32 (!%p958_p5), 1, %s765_s16   ;;  %p959_p7 = scmp.ne.s32.totalorder (!%p958_p5), %s954_s24, 0 }
  0x32   : > { %214 = sbr.rel (%p958_p5) target bundleno = 299 (0x12b), region = 32  ;;  %s591_s12 = sshll.u32 (!%p958_p5), %s216_s10, 6 }
  0x33   : > { %s217_s13 = scalar_lea.sflag (!%p958_p5), [#allocation3], %s216_s10  ;;  %s220_s15 = scalar_lea.vmem (!%p958_p5), [#allocation2], %s591_s12 }
  0x37   : > { %752 = dma.done.wait (%p959_p7), %s217_s13, 1024  }
  0x38   : > { %754 = vsyncadd (%p959_p7), %s217_s13, 4294966272 }
  0x39   : > { %756 = dma.done.wait (%p849_p3), [#allocation5], 128  }
  0x3a   : > { %758 = vsyncadd (%p849_p3), [#allocation5], 4294967168  ;;  %v787_v0 = vmov 0.0   ;;  %v788_v1 = vmov 0   ;;  %v288_v2 = vld [vmem:[%s220_s15 + $0x38] sm:$0xff]  ;;  %v287_v3 = vld [vmem:[%s220_s15 + $0x30] sm:$0xff]  ;;  %v373_v22 = vlaneseq }
  0x3b   : > { %364 = vmatprep.mubr.f32.mxu0 %v787_v0  ;;  %672 = vset.pattern.permute.xlu0 %v788_v1  ;;  %v286_v4 = vld [vmem:[%s220_s15 + $0x28] sm:$0xff]  ;;  %v285_v5 = vld [vmem:[%s220_s15 + $0x20] sm:$0xff]  ;;  %v284_v6 = vld [vmem:[%s220_s15 + $0x18] sm:$0xff]  ;;  %vm296_vm0 = vcmask 261120   ;;  %p263_p3 = scmp.lt.s32.totalorder %s773_s18, 1 }
  0x3c   : > { %324 = vmatprep.subr.mxu0 %v288_v2  ;;  %v283_v7 = vld [vmem:[%s220_s15 + $0x10] sm:$0xff]  ;;  %v290_v8 = vld [vmem:[%s948_s2] sm:$0xff]  ;;  %v282_v9 = vld [vmem:[%s220_s15 + $0x8] sm:$0xff]  ;;  %v374_v27 = vshrl.u32 %v373_v22, 7  ;;  %v789_v37 = vmov 1966171168  }
  0x3d   : > { %325 = vmatpush1.msra.mxu0 %v287_v3  ;;  %293 = vperm.xlu0 %672, %v290_v8   ;;  %v281_v10 = vld [vmem:[%s220_s15] sm:$0xff]  ;;  %s968_s18 = smov (!%p263_p3, %s773_s18), 1  ;;  %v415_v38 = vunpack.c.l.s4 %v789_v37  ;;  %vm430_vm13 = vcmp.lt.s32.totalorder %v373_v22, 256 }
  0x3e   : > { %326 = vmatprep.subr.mxu0 %v286_v4  ;;  %v289_v11 = vld [vmem:[#allocation4] sm:$0xff]  ;;  %s600_s23 = sshll.u32 %s968_s18, 4  ;;  %s595_s14 = sshll.u32 %s968_s18, 1 }
  0x3f   : > { %327 = vmatpush1.msra.mxu0 %v285_v5  ;;  %s270_s11 = scalar_lea.vmem %s949_s3, %s600_s23  ;;  %v416_v43 = vunpack.c.0.s8 %v415_v38  ;;  %s279_s27 = scalar_lea.vmem %s950_s4, %s595_s14 }
  0x40   : > { %328 = vmatprep.subr.mxu0 %v284_v6 }
  0x41   : > { %329 = vmatpush1.msra.mxu0 %v283_v7  ;;  %v419_v46 = vsub.s32 %v416_v43, %v374_v27 }
  0x42   : > { %330 = vmatprep.subr.mxu0 %v282_v9 }
  0x43   : > { %331 = vmatpush1.msra.mxu0 %v281_v10 }
  0x44   : > { %596 = vmatmul.mubr.msk.f32.vlgmr.msra.gmra.mxu0 %vm296_vm0, %v289_v11 }
  0xb8   : > { %v294_v12 = vpop.permute.xlu0 %293 }
 0x104   : > { %v366_v13 = vpop.f32.mrf.mxu0 }
 0x105   : > { %v367_v14 = vadd.f32 %v366_v13, %v294_v12 }
 0x106   : > { %v368_v15 = vpop.f32.mrf.mxu0 }
 0x107   : > { %371 = vst [vmem:[%s270_s11] sm:$0xff] %v367_v14  ;;  %v375_v16 = vrot.slane %v367_v14, 4  ;;  %v369_v17 = vadd.f32 %v368_v15, %v294_v12  ;;  %vm389_vm2 = vcmp.ne.f32.partialorder %v367_v14, %v367_v14 }
 0x109   : > { %v376_v18 = vmax.f32 %v367_v14, %v375_v16  ;;  %372 = vst [vmem:[%s270_s11 + $0x8] sm:$0xff] %v369_v17  ;;  %v381_v19 = vrot.slane %v369_v17, 4  ;;  %vm390_vm5 = vcmp.ne.f32.partialorder %v369_v17, %v369_v17 }
 0x10b   : > { %v377_v20 = vrot.slane %v376_v18, 2  ;;  %v382_v21 = vmax.f32 %v369_v17, %v381_v19 }
 0x10d   : > { %v378_v23 = vmax.f32 %v376_v18, %v377_v20  ;;  %v383_v24 = vrot.slane %v382_v21, 2 }
 0x10f   : > { %v379_v25 = vrot.slane %v378_v23, 1  ;;  %v384_v26 = vmax.f32 %v382_v21, %v383_v24 }
 0x111   : > { %v380_v28 = vmax.f32 %v378_v23, %v379_v25  ;;  %v385_v29 = vrot.slane %v384_v26, 1 }
 0x113   : > { %vm387_vm1 = vcmp.eq.f32.partialorder %v367_v14, %v380_v28  ;;  %v386_v30 = vmax.f32 %v384_v26, %v385_v29 }
 0x114   : > { %vm391_vm3 = vmor %vm387_vm1, %vm389_vm2 }
 0x115   : > { %v393_v31 = vsel %vm391_vm3, %v374_v27, 8  ;;  %vm388_vm4 = vcmp.eq.f32.partialorder %v369_v17, %v386_v30 }
 0x116   : > { %v395_v32 = vrot.slane %v393_v31, 4  ;;  %vm392_vm6 = vmor %vm388_vm4, %vm390_vm5 }
 0x117   : > { %v394_v33 = vsel %vm392_vm6, %v374_v27, 8 }
 0x118   : > { %vm396_vm7 = vcmp.lt.s32.totalorder %v393_v31, %v395_v32  ;;  %v404_v34 = vrot.slane %v394_v33, 4 }
 0x119   : > { %v397_v35 = vsel %vm396_vm7, %v393_v31, %v395_v32 }
 0x11a   : > { %v398_v36 = vrot.slane %v397_v35, 2  ;;  %vm405_vm8 = vcmp.lt.s32.totalorder %v394_v33, %v404_v34 }
 0x11b   : > { %v406_v39 = vsel %vm405_vm8, %v394_v33, %v404_v34 }
 0x11c   : > { %vm399_vm9 = vcmp.lt.s32.totalorder %v397_v35, %v398_v36  ;;  %v407_v40 = vrot.slane %v406_v39, 2 }
 0x11d   : > { %v400_v41 = vsel %vm399_vm9, %v397_v35, %v398_v36 }
 0x11e   : > { %v401_v42 = vrot.slane %v400_v41, 1  ;;  %vm408_vm10 = vcmp.lt.s32.totalorder %v406_v39, %v407_v40 }
 0x11f   : > { %v409_v44 = vsel %vm408_vm10, %v406_v39, %v407_v40 }
 0x120   : > { %vm402_vm11 = vcmp.lt.s32.totalorder %v400_v41, %v401_v42  ;;  %v410_v45 = vrot.slane %v409_v44, 1 }
 0x121   : > { %v403_v47 = vsel %vm402_vm11, %v400_v41, %v401_v42 }
 0x122   : > { %vm411_vm12 = vcmp.lt.s32.totalorder %v409_v44, %v410_v45 }
 0x123   : > { %v412_v48 = vsel %vm411_vm12, %v409_v44, %v410_v45 }
 0x124   : > { %v413_v49 = vcombine.low %v403_v47, %v412_v48 }
 0x126   : > { %v420_v50 = vrot.slane %v413_v49, %v419_v46 }
 0x128   : > { %v427_v51 = vrot.slane %v420_v50, %v419_v46 }
 0x12a   : > { %432 = vst.msk [vmem:[%s279_s27] sm:$0x3] %vm430_vm13, %v427_v51 }
 0x12b PF: > { %s19_s20 = sadd.s32 1, %s781_s20   ;;  %s960_s15 = smov %s765_s16 }
 0x12c   : > { %p16_p12 = scmp.ge.s32.totalorder %s19_s20, 4   ;;  %s961_s16 = smov %s769_s17 }
 0x12d   : > { %s962_s17 = smov %s900_s9  ;;  %s963_s18 = smov %s777_s19 }
 0x12e   : > { %s964_s19 = smov %s966_s7  ;;  %18 = sbr.rel (!%p16_p12) target bundleno = 5 (0x5), region = 88 }
 0x133   :  { %486 = vsyncpa [#allocation3], 1 }
 0x134   :  { %488 = vsyncpa [#allocation3 + $0x1], 1 }
 0x135   :  { %489 = vsyncpa [#allocation5], 1 }

</bundles_post_ra>
